<compile_context>
chip_gen: v5e
topology: v5e:2x2
jax: 0.10.0
libtpu: 0.0.40
codegen_flags: <defaults>
</compile_context>

<pallas_src>
import functools

import jax
import jax.numpy as jnp
from jax import lax
from jax.experimental import pallas as pl
from jax.experimental.pallas import tpu as pltpu


def _round_up(x, m):
    return ((x + m - 1) // m) * m


def _cdiv(a, b):
    return (a + b - 1) // b


def _wce_kernel(*refs, smoothing, has_weight, reduction, batch, need_w_part):
    it = iter(refs)
    pred_ref = next(it)
    tgt_ref = next(it)
    w_ref = next(it) if has_weight else None
    if reduction == 'none':
        out_ref = next(it)
        loss_out = w_out = None
    else:
        out_ref = None
        loss_out = next(it)
        w_out = next(it) if need_w_part else None

    xf = pred_ref[...].astype(jnp.float32)            # [TM, C] (f32 in registers)
    tm, c = xf.shape

    # Row statistics without materializing log_softmax / shifted logits:
    #   logp[j] = x[j] - m - lse  =>  nll = lse + m - x[target]
    #                                 smooth = lse + m - mean(x)
    m = jnp.max(xf, axis=-1, keepdims=True)                             # [TM, 1]
    lse = jnp.log(jnp.sum(jnp.exp(xf - m), axis=-1, keepdims=True))     # [TM, 1]

    tgt = tgt_ref[...]                                                  # [TM, 1]
    lane = lax.broadcasted_iota(jnp.int32, (tm, c), 1)
    hit = lane == tgt                                                   # [TM, C]
    tgt_x = jnp.sum(jnp.where(hit, xf, 0.0), axis=-1, keepdims=True)    # x[target]
    nll = lse + m - tgt_x

    if smoothing > 0.0:
        mean_x = jnp.sum(xf, axis=-1, keepdims=True) * (1.0 / c)
        smooth = lse + m - mean_x
        loss = (1.0 - smoothing) * nll + smoothing * smooth
    else:
        loss = nll

    if has_weight:
        w_row = jnp.sum(jnp.where(hit, w_ref[...].astype(jnp.float32), 0.0),
                        axis=-1, keepdims=True)                         # weight[target]
        loss = loss * w_row
    else:
        w_row = None

    if reduction == 'none':
        # Padded rows are sliced off in the wrapper; store the tile directly.
        out_ref[...] = loss
        return

    # 'mean' / 'sum': grid = (num_core_shards, tiles_per_shard); axis 1 reduces.
    core = pl.program_id(0)
    i = pl.program_id(1)
    g = pl.num_programs(1)
    row = (core * g + i) * tm + lax.broadcasted_iota(jnp.int32, (tm, 1), 0)
    valid = row < batch
    loss = jnp.where(valid, loss, 0.0)

    @pl.when(i == 0)
    def _():
        loss_out[...] = jnp.zeros_like(loss_out)
        if need_w_part:
            w_out[...] = jnp.zeros_like(w_out)

    loss_out[...] += jnp.sum(loss, axis=0, keepdims=True).reshape(1, 1, 1)
    if need_w_part:
        w_valid = jnp.where(valid, w_row, 0.0)
        w_out[...] += jnp.sum(w_valid, axis=0, keepdims=True).reshape(1, 1, 1)


def weighted_cross_entropy(logits, targets, weight=None,
                           label_smoothing=0.0, reduction='mean',
                           block_rows=None):
    """JAX/Pallas equivalent of WeightedCrossEntropy(weight, label_smoothing, reduction)."""
    assert reduction in ('mean', 'sum', 'none')
    B, C = logits.shape
    has_weight = weight is not None
    itemsize = jnp.dtype(logits.dtype).itemsize
    need_w_part = has_weight and label_smoothing == 0.0 and reduction == 'mean'

    # ---- batch tile: budget 2x input double-buffer + ~3 tile-sized f32 temps
    #      under ~24 MiB (safe within v7x's 32 MiB scoped VMEM). ----
    if block_rows is None:
        per_row = C * (2 * itemsize + 12)
        tm = (24 * 1024 * 1024) // max(1, per_row)
        tm = max(8, min(2048, (tm // 8) * 8))
    else:
        assert block_rows % 8 == 0, "block_rows must be a multiple of 8"
        tm = block_rows
    tm = min(tm, _round_up(B, 8))

    tiles = _cdiv(B, tm)
    if reduction == 'none':
        nc = 1
        g = tiles
    else:
        # Leading 'parallel' axis so v7x shards the batch across both TensorCores.
        nc = 2 if tiles >= 2 else 1
        g = _cdiv(tiles, nc)
    B_pad = nc * g * tm

    # ---- host-side prep (pad batch to a whole number of tiles) ----
    tgt_i32 = targets.astype(jnp.int32)
    if B_pad != B:
        logits_p = jnp.pad(logits, ((0, B_pad - B), (0, 0)))
        tgt_i32 = jnp.pad(tgt_i32, ((0, B_pad - B),))
    else:
        logits_p = logits
    tgt2d = tgt_i32.reshape(B_pad, 1)

    args = [logits_p, tgt2d]
    if reduction == 'none':
        in_specs = [pl.BlockSpec((tm, C), lambda i: (i, 0)),
                    pl.BlockSpec((tm, 1), lambda i: (i, 0))]
        if has_weight:
            in_specs.append(pl.BlockSpec((1, C), lambda i: (0, 0)))
            args.append(weight.astype(jnp.float32).reshape(1, C))
        out_shape = jax.ShapeDtypeStruct((B_pad, 1), jnp.float32)
        out_specs = pl.BlockSpec((tm, 1), lambda i: (i, 0))
        grid = (g,)
        semantics = ("parallel",)
        out_bytes = B_pad * 4
    else:
        in_specs = [pl.BlockSpec((tm, C), lambda c, i: (c * g + i, 0)),
                    pl.BlockSpec((tm, 1), lambda c, i: (c * g + i, 0))]
        if has_weight:
            in_specs.append(pl.BlockSpec((1, C), lambda c, i: (0, 0)))
            args.append(weight.astype(jnp.float32).reshape(1, C))
        part_spec = pl.BlockSpec((1, 1, 1), lambda c, i: (c, 0, 0))   # resident per-core
        if need_w_part:
            out_shape = (jax.ShapeDtypeStruct((nc, 1, 1), jnp.float32),
                         jax.ShapeDtypeStruct((nc, 1, 1), jnp.float32))
            out_specs = (part_spec, part_spec)
        else:
            out_shape = jax.ShapeDtypeStruct((nc, 1, 1), jnp.float32)
            out_specs = part_spec
        grid = (nc, g)
        semantics = ("parallel", "arbitrary")
        out_bytes = nc * 4 * (2 if need_w_part else 1)

    # vmem budget: double-buffered input tiles + tile-sized f32 temporaries + slack.
    tile_in = tm * C * itemsize
    vmem_limit = 2 * tile_in + 3 * tm * C * 4 + 8 * tm * 4 + 2 * C * 4 + (2 << 20)
    vmem_limit = int(min(30 * 2**20, max(4 * 2**20, vmem_limit)))

    cost = pl.CostEstimate(
        flops=int(7 * B_pad * C),
        transcendentals=int(B_pad * C + 2 * B_pad),
        bytes_accessed=int(B_pad * C * itemsize + B_pad * 4
                           + (C * 4 if has_weight else 0) + out_bytes))

    kernel = functools.partial(
        _wce_kernel,
        smoothing=float(label_smoothing),
        has_weight=has_weight,
        reduction=reduction,
        batch=B,
        need_w_part=need_w_part)

    out = pl.pallas_call(
        kernel,
        out_shape=out_shape,
        grid=grid,
        in_specs=in_specs,
        out_specs=out_specs,
        compiler_params=pltpu.CompilerParams(
            dimension_semantics=semantics,
            vmem_limit_bytes=vmem_limit),
        cost_estimate=cost,
    )(*args)

    if reduction == 'none':
        return out.reshape(-1)[:B]

    if need_w_part:
        loss_part, w_part = out
    else:
        loss_part, w_part = out, None
    total = jnp.sum(loss_part)
    if reduction == 'sum':
        return total
    # 'mean'
    if label_smoothing > 0.0 or not has_weight:
        return total / float(B)          # plain batch mean (LabelSmoothing / unweighted CE)
    return total / jnp.sum(w_part)       # PyTorch weighted-mean convention


def _reference(logits, targets, weight, label_smoothing, reduction):
    """Pure-JAX reference matching the PyTorch module semantics."""
    logp = jax.nn.log_softmax(logits.astype(jnp.float32), axis=-1)
    nll = -jnp.take_along_axis(logp, targets[:, None].astype(jnp.int32), axis=-1)[:, 0]
    if label_smoothing > 0.0:
        smooth = -logp.mean(axis=-1)
        loss = (1.0 - label_smoothing) * nll + label_smoothing * smooth
        if weight is not None:
            loss = loss * weight[targets]
        if reduction == 'mean':
            return loss.mean()
        if reduction == 'sum':
            return loss.sum()
        return loss
    else:
        if weight is not None:
            w = weight[targets]
            loss = nll * w
            if reduction == 'mean':
                return loss.sum() / w.sum()
            if reduction == 'sum':
                return loss.sum()
            return loss
        if reduction == 'mean':
            return nll.mean()
        if reduction == 'sum':
            return nll.sum()
        return nll


if __name__ == "__main__":
    key = jax.random.PRNGKey(0)
    kx, kt, kw, kx2, kt2 = jax.random.split(key, 5)

    B, C = 8, 32
    logits = jax.random.normal(kx, (B, C), dtype=jnp.float32)
    targets = jax.random.randint(kt, (B,), 0, C, dtype=jnp.int32)
    weight = jax.random.uniform(kw, (C,), dtype=jnp.float32, minval=0.5, maxval=1.5)

    checks = []
    # Path 1: label_smoothing > 0 -> LabelSmoothingCrossEntropy criterion
    checks.append((weighted_cross_entropy(logits, targets, weight, 0.1, 'mean'),
                   _reference(logits, targets, weight, 0.1, 'mean')))
    # Path 2: label_smoothing == 0 -> nn.CrossEntropyLoss(weight) (weighted mean)
    checks.append((weighted_cross_entropy(logits, targets, weight, 0.0, 'mean'),
                   _reference(logits, targets, weight, 0.0, 'mean')))
    # Other reductions (with and without class weights)
    checks.append((weighted_cross_entropy(logits, targets, weight, 0.1, 'sum'),
                   _reference(logits, targets, weight, 0.1, 'sum')))
    checks.append((weighted_cross_entropy(logits, targets, None, 0.0, 'none'),
                   _reference(logits, targets, None, 0.0, 'none')))
    checks.append((weighted_cross_entropy(logits, targets, None, 0.0, 'mean'),
                   _reference(logits, targets, None, 0.0, 'mean')))

    # Multi-tile grid + batch padding + two-shard 'mean' (B=10, block_rows=8)
    B2 = 10
    logits2 = jax.random.normal(kx2, (B2, C), dtype=jnp.float32)
    targets2 = jax.random.randint(kt2, (B2,), 0, C, dtype=jnp.int32)
    checks.append((weighted_cross_entropy(logits2, targets2, weight, 0.0, 'mean',
                                          block_rows=8),
                   _reference(logits2, targets2, weight, 0.0, 'mean')))
    checks.append((weighted_cross_entropy(logits2, targets2, weight, 0.1, 'none',
                                          block_rows=8),
                   _reference(logits2, targets2, weight, 0.1, 'none')))
    checks.append((weighted_cross_entropy(logits2, targets2, weight, 0.1, 'sum',
                                          block_rows=8),
                   _reference(logits2, targets2, weight, 0.1, 'sum')))

    # bf16 logits (kernel upcasts in registers only)
    logits_bf = logits.astype(jnp.bfloat16)
    checks.append((weighted_cross_entropy(logits_bf, targets, weight, 0.0, 'mean'),
                   _reference(logits_bf, targets, weight, 0.0, 'mean')))

    for got, ref in checks:
        got = jax.block_until_ready(got)
        assert jnp.allclose(got, ref, rtol=1e-5, atol=1e-5), (got, ref)

    print("KERNEL_OK")
</pallas_src>

<mosaic_0001>
module attributes {stable_mosaic.version = 11 : i64} {
  func.func @_wce_kernel(%arg0: i32, %arg1: i32, %arg2: memref<8x32xf32, #tpu.memory_space<vmem>>, %arg3: memref<8x1xi32, #tpu.memory_space<vmem>>, %arg4: memref<1x32xf32, #tpu.memory_space<vmem>>, %arg5: memref<1x1x1xf32, #tpu.memory_space<vmem>>) attributes {dimension_semantics = [#tpu.dimension_semantics<parallel>, #tpu.dimension_semantics<arbitrary>], iteration_bounds = array<i64: 1, 1>, scalar_prefetch = 0 : i64, scratch_operands = 0 : i64, tpu.core_type = #tpu.core_type<tc>, window_params = [{transform_indices = @transform_0, window_bounds = array<i64: 8, 32>}, {transform_indices = @transform_1, window_bounds = array<i64: 8, 1>}, {pipeline_mode = #tpu.pipeline_mode<synchronous>, transform_indices = @transform_2, window_bounds = array<i64: 1, 32>}, {transform_indices = @transform_3, window_bounds = array<i64: 1, 1, 1>}]} {
    %c0 = arith.constant 0 : index
    %c0_0 = arith.constant 0 : index
    %0 = vector.load %arg2[%c0, %c0_0] : memref<8x32xf32, #tpu.memory_space<vmem>>, vector<8x32xf32>
    %cst = arith.constant dense<0xFF800000> : vector<8xf32>
    %1 = vector.multi_reduction <maximumf>, %0, %cst [1] : vector<8x32xf32> to vector<8xf32>
    %2 = vector.shape_cast %1 : vector<8xf32> to vector<8x1xf32>
    %3 = vector.broadcast %2 : vector<8x1xf32> to vector<8x32xf32>
    %4 = arith.subf %0, %3 : vector<8x32xf32>
    %5 = math.exp %4 : vector<8x32xf32>
    %cst_1 = arith.constant dense<0.000000e+00> : vector<8xf32>
    %6 = vector.multi_reduction <add>, %5, %cst_1 [1] : vector<8x32xf32> to vector<8xf32>
    %7 = vector.shape_cast %6 : vector<8xf32> to vector<8x1xf32>
    %8 = math.log %7 : vector<8x1xf32>
    %c0_2 = arith.constant 0 : index
    %c0_3 = arith.constant 0 : index
    %9 = vector.load %arg3[%c0_2, %c0_3] : memref<8x1xi32, #tpu.memory_space<vmem>>, vector<8x1xi32>
    %10 = tpu.iota {dimensions = array<i32: 1>} : vector<8x32xi32>
    %11 = vector.broadcast %9 : vector<8x1xi32> to vector<8x32xi32>
    %12 = arith.cmpi eq, %10, %11 : vector<8x32xi32>
    %cst_4 = arith.constant 0.000000e+00 : f32
    %13 = vector.broadcast %cst_4 : f32 to vector<8x32xf32>
    %14 = arith.select %12, %0, %13 : vector<8x32xi1>, vector<8x32xf32>
    %cst_5 = arith.constant dense<0.000000e+00> : vector<8xf32>
    %15 = vector.multi_reduction <add>, %14, %cst_5 [1] : vector<8x32xf32> to vector<8xf32>
    %16 = vector.shape_cast %15 : vector<8xf32> to vector<8x1xf32>
    %17 = arith.addf %8, %2 : vector<8x1xf32>
    %18 = arith.subf %17, %16 : vector<8x1xf32>
    %cst_6 = arith.constant dense<0.000000e+00> : vector<8xf32>
    %19 = vector.multi_reduction <add>, %0, %cst_6 [1] : vector<8x32xf32> to vector<8xf32>
    %20 = vector.shape_cast %19 : vector<8xf32> to vector<8x1xf32>
    %cst_7 = arith.constant 3.125000e-02 : f32
    %21 = vector.broadcast %cst_7 : f32 to vector<8x1xf32>
    %22 = arith.mulf %20, %21 : vector<8x1xf32>
    %23 = arith.addf %8, %2 : vector<8x1xf32>
    %24 = arith.subf %23, %22 : vector<8x1xf32>
    %cst_8 = arith.constant 0.899999976 : f32
    %25 = vector.broadcast %cst_8 : f32 to vector<8x1xf32>
    %26 = arith.mulf %25, %18 : vector<8x1xf32>
    %cst_9 = arith.constant 1.000000e-01 : f32
    %27 = vector.broadcast %cst_9 : f32 to vector<8x1xf32>
    %28 = arith.mulf %27, %24 : vector<8x1xf32>
    %29 = arith.addf %26, %28 : vector<8x1xf32>
    %c0_10 = arith.constant 0 : index
    %c0_11 = arith.constant 0 : index
    %30 = vector.load %arg4[%c0_10, %c0_11] : memref<1x32xf32, #tpu.memory_space<vmem>>, vector<1x32xf32>
    %cst_12 = arith.constant 0.000000e+00 : f32
    %31 = vector.shape_cast %30 : vector<1x32xf32> to vector<1x32xf32>
    %32 = vector.broadcast %31 : vector<1x32xf32> to vector<8x32xf32>
    %33 = vector.broadcast %cst_12 : f32 to vector<8x32xf32>
    %34 = arith.select %12, %32, %33 : vector<8x32xi1>, vector<8x32xf32>
    %cst_13 = arith.constant dense<0.000000e+00> : vector<8xf32>
    %35 = vector.multi_reduction <add>, %34, %cst_13 [1] : vector<8x32xf32> to vector<8xf32>
    %36 = vector.shape_cast %35 : vector<8xf32> to vector<8x1xf32>
    %37 = arith.mulf %29, %36 : vector<8x1xf32>
    %c1_i32 = arith.constant 1 : i32
    %38 = arith.muli %arg0, %c1_i32 : i32
    %39 = arith.addi %38, %arg1 : i32
    %c8_i32 = arith.constant 8 : i32
    %40 = arith.muli %39, %c8_i32 : i32
    %41 = tpu.iota {dimensions = array<i32: 0>} : vector<8x1xi32>
    %42 = vector.broadcast %40 : i32 to vector<8x1xi32>
    %43 = arith.addi %42, %41 : vector<8x1xi32>
    %c8_i32_14 = arith.constant 8 : i32
    %44 = vector.broadcast %c8_i32_14 : i32 to vector<8x1xi32>
    %45 = arith.cmpi slt, %43, %44 : vector<8x1xi32>
    %cst_15 = arith.constant 0.000000e+00 : f32
    %46 = vector.broadcast %cst_15 : f32 to vector<8x1xf32>
    %47 = arith.select %45, %37, %46 : vector<8x1xi1>, vector<8x1xf32>
    %c0_i32 = arith.constant 0 : i32
    %48 = arith.cmpi eq, %arg1, %c0_i32 : i32
    %49 = arith.extui %48 : i1 to i32
    %c0_i32_16 = arith.constant 0 : i32
    %50 = arith.cmpi ne, %49, %c0_i32_16 : i32
    scf.if %50 {
      %cst_24 = arith.constant 0.000000e+00 : f32
      %57 = vector.broadcast %cst_24 : f32 to vector<1x1x1xf32>
      %c0_25 = arith.constant 0 : index
      %c0_26 = arith.constant 0 : index
      %c0_27 = arith.constant 0 : index
      %58 = vector.load %arg5[%c0_25, %c0_26, %c0_27] : memref<1x1x1xf32, #tpu.memory_space<vmem>>, vector<1x1x1xf32>
      tpu.vector_store %arg5[%c0_25, %c0_26, %c0_27], %57 {strides = array<i32>} : memref<1x1x1xf32, #tpu.memory_space<vmem>>, vector<1x1x1xf32>,
    } else {
    }
    %c0_17 = arith.constant 0 : index
    %c0_18 = arith.constant 0 : index
    %c0_19 = arith.constant 0 : index
    %51 = vector.load %arg5[%c0_17, %c0_18, %c0_19] : memref<1x1x1xf32, #tpu.memory_space<vmem>>, vector<1x1x1xf32>
    %cst_20 = arith.constant dense<0.000000e+00> : vector<1xf32>
    %52 = vector.multi_reduction <add>, %47, %cst_20 [0] : vector<8x1xf32> to vector<1xf32>
    %53 = vector.shape_cast %52 : vector<1xf32> to vector<1x1xf32>
    %54 = vector.shape_cast %53 : vector<1x1xf32> to vector<1x1x1xf32>
    %55 = arith.addf %51, %54 : vector<1x1x1xf32>
    %c0_21 = arith.constant 0 : index
    %c0_22 = arith.constant 0 : index
    %c0_23 = arith.constant 0 : index
    %56 = vector.load %arg5[%c0_21, %c0_22, %c0_23] : memref<1x1x1xf32, #tpu.memory_space<vmem>>, vector<1x1x1xf32>
    tpu.vector_store %arg5[%c0_21, %c0_22, %c0_23], %55 {strides = array<i32>} : memref<1x1x1xf32, #tpu.memory_space<vmem>>, vector<1x1x1xf32>,
    return
  }
  func.func @transform_0(%arg0: i32, %arg1: i32) -> (i32, i32) {
    %c1_i32 = arith.constant 1 : i32
    %0 = arith.muli %arg0, %c1_i32 : i32
    %1 = arith.addi %0, %arg1 : i32
    %c0_i32 = arith.constant 0 : i32
    %c0_i32_0 = arith.constant 0 : i32
    return %1, %c0_i32 : i32, i32
  }
  func.func @transform_1(%arg0: i32, %arg1: i32) -> (i32, i32) {
    %c1_i32 = arith.constant 1 : i32
    %0 = arith.muli %arg0, %c1_i32 : i32
    %1 = arith.addi %0, %arg1 : i32
    %c0_i32 = arith.constant 0 : i32
    %c0_i32_0 = arith.constant 0 : i32
    return %1, %c0_i32 : i32, i32
  }
  func.func @transform_2(%arg0: i32, %arg1: i32) -> (i32, i32) {
    %c0_i32 = arith.constant 0 : i32
    %c0_i32_0 = arith.constant 0 : i32
    %c0_i32_1 = arith.constant 0 : i32
    return %c0_i32, %c0_i32_0 : i32, i32
  }
  func.func @transform_3(%arg0: i32, %arg1: i32) -> (i32, i32, i32) {
    %c0_i32 = arith.constant 0 : i32
    %c0_i32_0 = arith.constant 0 : i32
    %c0_i32_1 = arith.constant 0 : i32
    return %arg0, %c0_i32, %c0_i32_0 : i32, i32, i32
  }
}

</mosaic_0001>

<bundles_post_ra>
// kernel: tpu_custom_call.1
= control target key start
LH: loop header
LB: loop body
LE: loop exit
PB: predicated region body
PF: predicated region fallthrough
CT: control target
= control target key end

     0   :  { %vm50_vm0 = vcmask 261120   ;;  %v179_v2 = vmov 0   ;;  %s221_s0 = inlined_call_operand.vmem [shape: f32[8,32], index: 0, kind: input, shape index: {}]   ;;  %s222_s1 = inlined_call_operand.vmem [shape: s32[8,1], index: 1, kind: input, shape index: {}]   ;;  %s223_s2 = inlined_call_operand.vmem [shape: f32[1,32], index: 2, kind: input, shape index: {}]   ;;  %s224_s3 = inlined_call_operand.hbm [shape: f32[1,1,1], index: 3, kind: output, shape index: {}]  }
   0x1   :  { %v49_v0 = vld [vmem:[%s221_s0] sm:$0xff]  ;;  %147 = vset.pattern.permute.xlu0 %v179_v2 }
   0x2   :  { %v51_v1 = vsel %vm50_vm0, %v49_v0, -inf }
   0x3   :  { %8 = vsyncpa [#allocation3], 0  ;;  %52 = vmax.xlane.f32.xlu0 %v51_v1  ;;  %v62_v3 = vld [vmem:[%s222_s1] sm:$0xff]  ;;  %v63_v9 = vlaneseq  ;;  %v75_v11 = vsel %vm50_vm0, %v49_v0, 0.0  ;;  %vm104_vm2 = vcmask 0   ;;  %v180_v18 = vmov 0.0  }
   0x4   :  { %v148_v15 = vld [vmem:[%s223_s2] ss:$0 sm:$0xff]  ;;  %105 = vst.msk [vmem:[#allocation2] sm:$0x1] %vm104_vm2, %v180_v18  ;;  %s181_s2 = smov [#allocation2]   ;;  %s123_s19 = sshll.u32 %s224_s3, 4  ;;  %s124_s19 = int_to_ptr.hbm [resolvable:$true] %s123_s19 }
   0x5   :  { %v64_v10 = vand.u32 127, %v63_v9  ;;  %s121_s16 = sshll.u32 %s181_s2, 4  ;;  %s122_s16 = int_to_ptr.vmem [resolvable:$true] %s121_s16 }
   0xb   :  { %v106_v38 = vld [vmem:[#allocation2] sm:$0x1] }
  0x17   :  { %66 = vperm.xlu0 %147, %v62_v3  }
  0x76   :  { %v53_v4 = vpop.xlane.xlu0 %52 }
  0x77   :  { %v54_v5 = vsub.f32 %v49_v0, %v53_v4 }
  0x79   :  { %v55_v6 = vmul.f32 1.442695, %v54_v5 }
  0x7b   :  { %149 = vpow2.f32 %v55_v6 }
  0x81   :  { %v150_v7 = vpop.eup %149 }
  0x82   :  { %v57_v8 = vsel %vm50_vm0, %v150_v7, 0.0 }
  0x83   :  { %58 = vadd.xlane.f32.xlu1 %v57_v8 }
  0x89   :  { %v67_v12 = vpop.permute.xlu0 %66 }
  0x8a   :  { %vm68_vm1 = vcmp.eq.s32.totalorder %v64_v10, %v67_v12 }
  0x8b   :  { %76 = vadd.xlane.f32.xlu1 %v75_v11  ;;  %v69_v13 = vsel %vm68_vm1, %v49_v0, 0.0  ;;  %v87_v16 = vsel %vm68_vm1, %v148_v15, 0.0 }
  0x8c   :  { %v70_v14 = vsel %vm50_vm0, %v69_v13, 0.0  ;;  %v88_v17 = vsel %vm50_vm0, %v87_v16, 0.0 }
  0x8d   :  { %71 = vadd.xlane.f32.xlu2 %v70_v14 }
  0x95   :  { %89 = vadd.xlane.f32.xlu2 %v88_v17 }
  0xf6   :  { %v59_v19 = vpop.xlane.xlu1 %58 }
  0xf7   :  { %151 = vlog2.f32 %v59_v19 }
  0xfd   :  { %v152_v20 = vpop.eup %151 }
  0xfe   :  { %v61_v21 = vmul.f32 0.6931472, %v152_v20  ;;  %v77_v22 = vpop.xlane.xlu1 %76 }
  0xff   :  { %v78_v23 = vmul.f32 0.03125, %v77_v22 }
 0x100   :  { %v73_v24 = vadd.f32 %v61_v21, %v53_v4  ;;  %v72_v25 = vpop.xlane.xlu2 %71 }
 0x102   :  { %v79_v26 = vsub.f32 %v73_v24, %v78_v23  ;;  %v74_v27 = vsub.f32 %v73_v24, %v72_v25 }
 0x104   :  { %v81_v28 = vmul.f32 0.1, %v79_v26  ;;  %v80_v29 = vmul.f32 0.9, %v74_v27 }
 0x106   :  { %v82_v30 = vadd.f32 %v81_v28, %v80_v29 }
 0x108   :  { %v90_v31 = vpop.xlane.xlu2 %89 }
 0x109   :  { %v91_v32 = vmul.f32 %v90_v31, %v82_v30 }
 0x10b   :  { %v107_v33 = vrot.slane %v91_v32, 4 }
 0x10d   :  { %v108_v34 = vadd.f32 %v107_v33, %v91_v32 }
 0x10f   :  { %v109_v35 = vrot.slane %v108_v34, 2 }
 0x111   :  { %v110_v36 = vadd.f32 %v109_v35, %v108_v34 }
 0x113   :  { %v111_v37 = vrot.slane %v110_v36, 1 }
 0x115   :  { %v112_v39 = vadd.f32 %v111_v37, %v110_v36 }
 0x117   :  { %v113_v40 = vadd.f32 %v112_v39, %v106_v38 }
 0x119   :  { %115 = vst.msk [vmem:[#allocation2] sm:$0x1] %vm104_vm2, %v113_v40 }
 0x11a   :  { %126 = dma.vmem_to_hbm [thread:$0]  %s122_s16, 16, %s124_s19, [#allocation3]  }
 0x11b   :  { %177 = dma.done.wait [#allocation3], 16  }
 0x11c   :  { %178 = vsyncadd [#allocation3], 4294967280 }
 0x11d   :  { %131 = vsyncpa [#allocation3], 1 }

</bundles_post_ra>
